<compile_context>
chip_gen: v7x
topology: tpu7x:2x2x1
jax: 0.10.0
libtpu: 0.0.40
codegen_flags: <defaults>
</compile_context>

<pallas_src>
import functools

import jax
import jax.numpy as jnp
from jax.experimental import pallas as pl
from jax.experimental.pallas import tpu as pltpu

# ----------------------- small synthetic vision config ----------------------
IMAGE_SIZE = 16
PATCH_SIZE = 8
CHANNELS = 3
HIDDEN = 32
HEADS = 4
HEAD_DIM = HIDDEN // HEADS
INTERMEDIATE = 64
LAYERS = 2
SELECT_LAYER = -2          # args.mm_vision_select_layer
SELECT_FEATURE = "patch"   # args.mm_vision_select_feature
LN_EPS = 1e-5
MATMUL_DTYPE = jnp.bfloat16  # MXU operand dtype; accumulation is always f32

# Full-array-in-VMEM spec for (small) weights shared across grid steps.
_VMEM_FULL = pl.BlockSpec(memory_space=pltpu.MemorySpace.VMEM)


# --------------------------- in-kernel math helpers ---------------------------
def _layernorm(x, g_ref, b_ref):
    """LayerNorm over the last dim; x is f32 [rows, D], g/b refs are [1, D]."""
    mu = jnp.mean(x, axis=-1, keepdims=True)
    xc = x - mu
    var = jnp.mean(xc * xc, axis=-1, keepdims=True)
    y = xc * jax.lax.rsqrt(var + LN_EPS)
    return y * g_ref[...].astype(jnp.float32) + b_ref[...].astype(jnp.float32)


def _matmul(x_f32, w_ref):
    """MXU matmul: bf16 operands, f32 accumulation."""
    return jnp.dot(x_f32.astype(w_ref.dtype), w_ref[...],
                   preferred_element_type=jnp.float32)


# ------------------------------- Pallas kernels ------------------------------
def _embed_kernel(patches_ref, patch_w_ref, cls_ref, pos_ref, g_ref, b_ref, o_ref):
    """Patch matmul (bias-free conv) + cls token + pos emb + pre_layrnorm, one image."""
    p = patches_ref[0].astype(jnp.float32)                       # [NP, C*P*P]
    patch_embeds = _matmul(p, patch_w_ref)                       # [NP, D]
    x = jnp.concatenate(
        [cls_ref[...].astype(jnp.float32), patch_embeds], axis=0)  # [T, D]
    x = x + pos_ref[...].astype(jnp.float32)
    o_ref[0] = _layernorm(x, g_ref, b_ref).astype(o_ref.dtype)


def _encoder_layer_kernel(h_ref,
                          ln1_g_ref, ln1_b_ref,
                          qkv_w_ref, qkv_b_ref,
                          out_w_ref, out_b_ref,
                          ln2_g_ref, ln2_b_ref,
                          fc1_w_ref, fc1_b_ref,
                          fc2_w_ref, fc2_b_ref,
                          o_ref, *, heads, head_dim, scale):
    """One full CLIP encoder layer for one image, fully VMEM-resident."""
    D = heads * head_dim
    x = h_ref[0].astype(jnp.float32)                              # [T, D]

    # --- self-attention block: LN1 -> fused QKV -> per-head attn -> out proj ---
    n1 = _layernorm(x, ln1_g_ref, ln1_b_ref)
    qkv = _matmul(n1, qkv_w_ref) + qkv_b_ref[...].astype(jnp.float32)   # [T, 3D]
    q = qkv[:, 0:D] * scale
    k = qkv[:, D:2 * D]
    v = qkv[:, 2 * D:3 * D]

    head_outs = []
    for h in range(heads):                                        # statically unrolled
        lo = h * head_dim
        hi = lo + head_dim
        qh = q[:, lo:hi]
        kh = k[:, lo:hi]
        vh = v[:, lo:hi]
        # scores = qh @ kh.T (contract last dims; no explicit transpose needed)
        s = jax.lax.dot_general(qh, kh, (((1,), (1,)), ((), ())),
                                preferred_element_type=jnp.float32)     # [T, T]
        s = s - jnp.max(s, axis=-1, keepdims=True)
        p = jnp.exp(s)
        p = p * pl.reciprocal(jnp.sum(p, axis=-1, keepdims=True), approx=True)
        head_outs.append(jnp.dot(p, vh, preferred_element_type=jnp.float32))
    attn = jnp.concatenate(head_outs, axis=-1)                    # [T, D]

    x = x + _matmul(attn, out_w_ref) + out_b_ref[...].astype(jnp.float32)

    # --- MLP block: LN2 -> fc1 + quick_gelu -> fc2 ---
    n2 = _layernorm(x, ln2_g_ref, ln2_b_ref)
    hmid = _matmul(n2, fc1_w_ref) + fc1_b_ref[...].astype(jnp.float32)
    hmid = hmid * jax.nn.sigmoid(1.702 * hmid)                    # CLIP quick_gelu
    x = x + _matmul(hmid, fc2_w_ref) + fc2_b_ref[...].astype(jnp.float32)

    o_ref[0] = x.astype(o_ref.dtype)


# ------------------------------ pallas_call wrappers --------------------------
def pallas_embed(patches, params):
    """patches: [B, num_patches, C*P*P] -> hidden [B, T, D] (post pre_layrnorm)."""
    B, NP, PD = patches.shape
    T = NP + 1
    in_tok = pl.BlockSpec((1, NP, PD), lambda b: (b, 0, 0))
    out_tok = pl.BlockSpec((1, T, HIDDEN), lambda b: (b, 0, 0))
    return pl.pallas_call(
        _embed_kernel,
        out_shape=jax.ShapeDtypeStruct((B, T, HIDDEN), jnp.float32),
        grid=(B,),
        in_specs=[in_tok] + [_VMEM_FULL] * 5,
        out_specs=out_tok,
        compiler_params=pltpu.CompilerParams(dimension_semantics=("parallel",)),
    )(patches,
      params["patch_w"],
      params["class_embedding"],
      params["pos_emb"],
      params["pre_ln_g"],
      params["pre_ln_b"])


def pallas_encoder_layer(hidden, lyr):
    """One fused encoder layer: [B, T, D] -> [B, T, D]."""
    B, T, D = hidden.shape
    tok = pl.BlockSpec((1, T, D), lambda b: (b, 0, 0))
    kernel = functools.partial(_encoder_layer_kernel, heads=HEADS,
                               head_dim=HEAD_DIM, scale=HEAD_DIM ** -0.5)
    return pl.pallas_call(
        kernel,
        out_shape=jax.ShapeDtypeStruct((B, T, D), hidden.dtype),
        grid=(B,),
        in_specs=[tok] + [_VMEM_FULL] * 12,
        out_specs=tok,
        compiler_params=pltpu.CompilerParams(dimension_semantics=("parallel",)),
    )(hidden,
      lyr["ln1_g"], lyr["ln1_b"],
      lyr["qkv_w"], lyr["qkv_b"],
      lyr["out_w"], lyr["out_b"],
      lyr["ln2_g"], lyr["ln2_b"],
      lyr["fc1_w"], lyr["fc1_b"],
      lyr["fc2_w"], lyr["fc2_b"])


# ------------------------------ parameter setup ------------------------------
def make_params(key):
    kit = iter(jax.random.split(key, 256))

    def nrm(shape, s=0.02, dtype=jnp.float32):
        return (s * jax.random.normal(next(kit), shape, jnp.float32)).astype(dtype)

    patch_dim = CHANNELS * PATCH_SIZE * PATCH_SIZE
    num_patches = (IMAGE_SIZE // PATCH_SIZE) ** 2
    num_pos = num_patches + 1

    params = {
        "class_embedding": nrm((1, HIDDEN)),
        # conv weight [D, C, P, P] flattened over (C, P, P) -> [C*P*P, D]; conv has no bias
        "patch_w": nrm((patch_dim, HIDDEN), dtype=MATMUL_DTYPE),
        "pos_emb": nrm((num_pos, HIDDEN)),
        "pre_ln_g": jnp.ones((1, HIDDEN), jnp.float32),
        "pre_ln_b": jnp.zeros((1, HIDDEN), jnp.float32),
        "layers": [],
    }
    for _ in range(LAYERS):
        params["layers"].append(dict(
            ln1_g=jnp.ones((1, HIDDEN), jnp.float32),
            ln1_b=jnp.zeros((1, HIDDEN), jnp.float32),
            # fused QKV: [D, 3D] weight, [1, 3D] bias
            qkv_w=nrm((HIDDEN, 3 * HIDDEN), dtype=MATMUL_DTYPE),
            qkv_b=nrm((1, 3 * HIDDEN)),
            out_w=nrm((HIDDEN, HIDDEN), dtype=MATMUL_DTYPE),
            out_b=nrm((1, HIDDEN)),
            ln2_g=jnp.ones((1, HIDDEN), jnp.float32),
            ln2_b=jnp.zeros((1, HIDDEN), jnp.float32),
            fc1_w=nrm((HIDDEN, INTERMEDIATE), dtype=MATMUL_DTYPE),
            fc1_b=nrm((1, INTERMEDIATE)),
            fc2_w=nrm((INTERMEDIATE, HIDDEN), dtype=MATMUL_DTYPE),
            fc2_b=nrm((1, HIDDEN)),
        ))
    return params


# ------------------------------- model forward -------------------------------
def image_tower_forward(params, images):
    """CLIPVisionTransformer forward with output_hidden_states=True.

    images: [B, C, H, W] (NCHW).  Returns list of hidden states, each [B, T, D].
    """
    B, C, H, W = images.shape
    P = PATCH_SIZE
    gh, gw = H // P, W // P
    x = images.astype(jnp.float32)

    # patch "conv" (stride=P, no padding, no bias) == patch-flatten + matmul
    patches = x.reshape(B, C, gh, P, gw, P).transpose(0, 2, 4, 1, 3, 5)
    patches = patches.reshape(B, gh * gw, C * P * P)

    hidden = pallas_embed(patches, params)          # [B, T, D] (post pre_layrnorm)

    hidden_states = [hidden]
    for lyr in params["layers"]:
        hidden = pallas_encoder_layer(hidden, lyr)
        hidden_states.append(hidden)
    return hidden_states


def feature_select(hidden_states, select_layer=SELECT_LAYER, select_feature=SELECT_FEATURE):
    feats = hidden_states[select_layer]
    if select_feature == "patch":
        feats = feats[:, 1:]
    elif select_feature == "cls_patch":
        pass
    else:
        raise ValueError(f"Unexpected select feature: {select_feature}")
    return feats


@jax.jit
def _tower_features(params, images):
    return feature_select(image_tower_forward(params, images))


def language_bind_image_tower_forward(params, images):
    """Mirrors LanguageBindImageTower.forward: accepts a batched array or a list."""
    if isinstance(images, (list, tuple)):
        # Batch all list entries through one forward (amortizes every kernel launch),
        # then split back into per-image [1, num_patches, D] features.
        batch = jnp.stack([jnp.asarray(img).astype(jnp.float32) for img in images], axis=0)
        feats = _tower_features(params, batch)
        return [feats[i:i + 1].astype(jnp.asarray(images[i]).dtype)
                for i in range(len(images))]
    feats = _tower_features(params, images.astype(jnp.float32))
    return feats.astype(images.dtype)


# ------------------------------------ main ------------------------------------
if __name__ == "__main__":
    key = jax.random.PRNGKey(0)
    pkey, xkey = jax.random.split(key)
    params = make_params(pkey)

    images = jax.random.normal(xkey, (2, CHANNELS, IMAGE_SIZE, IMAGE_SIZE), jnp.float32)

    # batched path
    feats = language_bind_image_tower_forward(params, images)
    feats = jax.block_until_ready(feats)

    num_patches = (IMAGE_SIZE // PATCH_SIZE) ** 2
    assert feats.shape == (2, num_patches, HIDDEN), feats.shape
    assert feats.dtype == images.dtype
    assert bool(jnp.all(jnp.isfinite(feats)))

    # list path (stacked into a single batched forward internally)
    feats_list = language_bind_image_tower_forward(params, [images[0], images[1]])
    feats_list = jax.block_until_ready(feats_list)
    assert len(feats_list) == 2
    assert feats_list[0].shape == (1, num_patches, HIDDEN)
    assert bool(jnp.all(jnp.isfinite(feats_list[0])))

    print("KERNEL_OK")
</pallas_src>

<mosaic_0001>
module attributes {stable_mosaic.version = 11 : i64} {
  func.func @_embed_kernel(%arg0: i32, %arg1: memref<1x4x192xf32, #tpu.memory_space<vmem>>, %arg2: memref<192x32xbf16, #tpu.memory_space<vmem>>, %arg3: memref<1x32xf32, #tpu.memory_space<vmem>>, %arg4: memref<5x32xf32, #tpu.memory_space<vmem>>, %arg5: memref<1x32xf32, #tpu.memory_space<vmem>>, %arg6: memref<1x32xf32, #tpu.memory_space<vmem>>, %arg7: memref<1x5x32xf32, #tpu.memory_space<vmem>>) attributes {dimension_semantics = [#tpu.dimension_semantics<parallel>], iteration_bounds = array<i64: 2>, scalar_prefetch = 0 : i64, scratch_operands = 0 : i64, tpu.core_type = #tpu.core_type<tc>, window_params = [{transform_indices = @transform_0, window_bounds = array<i64: 1, 4, 192>}, {pipeline_mode = #tpu.pipeline_mode<synchronous>, transform_indices = @transform_1, window_bounds = array<i64: 192, 32>}, {pipeline_mode = #tpu.pipeline_mode<synchronous>, transform_indices = @transform_2, window_bounds = array<i64: 1, 32>}, {pipeline_mode = #tpu.pipeline_mode<synchronous>, transform_indices = @transform_3, window_bounds = array<i64: 5, 32>}, {pipeline_mode = #tpu.pipeline_mode<synchronous>, transform_indices = @transform_4, window_bounds = array<i64: 1, 32>}, {pipeline_mode = #tpu.pipeline_mode<synchronous>, transform_indices = @transform_5, window_bounds = array<i64: 1, 32>}, {transform_indices = @transform_6, window_bounds = array<i64: 1, 5, 32>}]} {
    %c0 = arith.constant 0 : index
    %c0_0 = arith.constant 0 : index
    %c0_1 = arith.constant 0 : index
    %0 = vector.load %arg1[%c0, %c0_0, %c0_1] : memref<1x4x192xf32, #tpu.memory_space<vmem>>, vector<1x4x192xf32>
    %1 = vector.shape_cast %0 : vector<1x4x192xf32> to vector<4x192xf32>
    %2 = arith.truncf %1 : vector<4x192xf32> to vector<4x192xbf16>
    %c0_2 = arith.constant 0 : index
    %c0_3 = arith.constant 0 : index
    %3 = vector.load %arg2[%c0_2, %c0_3] : memref<192x32xbf16, #tpu.memory_space<vmem>>, vector<192x32xbf16>
    %cst = arith.constant dense<0.000000e+00> : vector<4x32xf32>
    %4 = tpu.matmul %2, %3, %cst {dimension_numbers = #tpu.dot_dimension_numbers<[1], [0], [0], [1], [0, 0, 1, 1], [], []>} : vector<4x192xbf16>, vector<192x32xbf16>, vector<4x32xf32> -> vector<4x32xf32>
    %c0_4 = arith.constant 0 : index
    %c0_5 = arith.constant 0 : index
    %5 = vector.load %arg3[%c0_4, %c0_5] : memref<1x32xf32, #tpu.memory_space<vmem>>, vector<1x32xf32>
    %6 = tpu.concatenate %5, %4 in 0 : vector<1x32xf32>, vector<4x32xf32> -> vector<5x32xf32>
    %c0_6 = arith.constant 0 : index
    %c0_7 = arith.constant 0 : index
    %7 = vector.load %arg4[%c0_6, %c0_7] : memref<5x32xf32, #tpu.memory_space<vmem>>, vector<5x32xf32>
    %8 = arith.addf %6, %7 : vector<5x32xf32>
    %cst_8 = arith.constant dense<0.000000e+00> : vector<5xf32>
    %9 = vector.multi_reduction <add>, %8, %cst_8 [1] : vector<5x32xf32> to vector<5xf32>
    %10 = vector.shape_cast %9 : vector<5xf32> to vector<5x1xf32>
    %cst_9 = arith.constant 3.200000e+01 : f32
    %11 = vector.broadcast %cst_9 : f32 to vector<5x1xf32>
    %12 = arith.divf %10, %11 : vector<5x1xf32>
    %13 = vector.broadcast %12 : vector<5x1xf32> to vector<5x32xf32>
    %14 = arith.subf %8, %13 : vector<5x32xf32>
    %15 = arith.mulf %14, %14 : vector<5x32xf32>
    %cst_10 = arith.constant dense<0.000000e+00> : vector<5xf32>
    %16 = vector.multi_reduction <add>, %15, %cst_10 [1] : vector<5x32xf32> to vector<5xf32>
    %17 = vector.shape_cast %16 : vector<5xf32> to vector<5x1xf32>
    %cst_11 = arith.constant 3.200000e+01 : f32
    %18 = vector.broadcast %cst_11 : f32 to vector<5x1xf32>
    %19 = arith.divf %17, %18 : vector<5x1xf32>
    %cst_12 = arith.constant 9.99999974E-6 : f32
    %20 = vector.broadcast %cst_12 : f32 to vector<5x1xf32>
    %21 = arith.addf %19, %20 : vector<5x1xf32>
    %22 = math.rsqrt %21 : vector<5x1xf32>
    %23 = vector.broadcast %22 : vector<5x1xf32> to vector<5x32xf32>
    %24 = arith.mulf %14, %23 : vector<5x32xf32>
    %c0_13 = arith.constant 0 : index
    %c0_14 = arith.constant 0 : index
    %25 = vector.load %arg5[%c0_13, %c0_14] : memref<1x32xf32, #tpu.memory_space<vmem>>, vector<1x32xf32>
    %26 = vector.broadcast %25 : vector<1x32xf32> to vector<5x32xf32>
    %27 = arith.mulf %24, %26 : vector<5x32xf32>
    %c0_15 = arith.constant 0 : index
    %c0_16 = arith.constant 0 : index
    %28 = vector.load %arg6[%c0_15, %c0_16] : memref<1x32xf32, #tpu.memory_space<vmem>>, vector<1x32xf32>
    %29 = vector.broadcast %28 : vector<1x32xf32> to vector<5x32xf32>
    %30 = arith.addf %27, %29 : vector<5x32xf32>
    %c0_17 = arith.constant 0 : index
    %c0_18 = arith.constant 0 : index
    %c0_19 = arith.constant 0 : index
    %31 = vector.load %arg7[%c0_17, %c0_18, %c0_19] : memref<1x5x32xf32, #tpu.memory_space<vmem>>, vector<1x5x32xf32>
    %32 = vector.shape_cast %31 : vector<1x5x32xf32> to vector<5x32xf32>
    %33 = vector.shape_cast %30 : vector<5x32xf32> to vector<1x5x32xf32>
    tpu.vector_store %arg7[%c0_17, %c0_18, %c0_19], %33 {strides = array<i32>} : memref<1x5x32xf32, #tpu.memory_space<vmem>>, vector<1x5x32xf32>,
    return
  }
  func.func @transform_0(%arg0: i32) -> (i32, i32, i32) {
    %c0_i32 = arith.constant 0 : i32
    %c0_i32_0 = arith.constant 0 : i32
    %c0_i32_1 = arith.constant 0 : i32
    return %arg0, %c0_i32, %c0_i32_0 : i32, i32, i32
  }
  func.func @transform_1(%arg0: i32) -> (i32, i32) {
    %c0_i32 = arith.constant 0 : i32
    %c0_i32_0 = arith.constant 0 : i32
    %c0_i32_1 = arith.constant 0 : i32
    return %c0_i32, %c0_i32_0 : i32, i32
  }
  func.func @transform_2(%arg0: i32) -> (i32, i32) {
    %c0_i32 = arith.constant 0 : i32
    %c0_i32_0 = arith.constant 0 : i32
    %c0_i32_1 = arith.constant 0 : i32
    return %c0_i32, %c0_i32_0 : i32, i32
  }
  func.func @transform_3(%arg0: i32) -> (i32, i32) {
    %c0_i32 = arith.constant 0 : i32
    %c0_i32_0 = arith.constant 0 : i32
    %c0_i32_1 = arith.constant 0 : i32
    return %c0_i32, %c0_i32_0 : i32, i32
  }
  func.func @transform_4(%arg0: i32) -> (i32, i32) {
    %c0_i32 = arith.constant 0 : i32
    %c0_i32_0 = arith.constant 0 : i32
    %c0_i32_1 = arith.constant 0 : i32
    return %c0_i32, %c0_i32_0 : i32, i32
  }
  func.func @transform_5(%arg0: i32) -> (i32, i32) {
    %c0_i32 = arith.constant 0 : i32
    %c0_i32_0 = arith.constant 0 : i32
    %c0_i32_1 = arith.constant 0 : i32
    return %c0_i32, %c0_i32_0 : i32, i32
  }
  func.func @transform_6(%arg0: i32) -> (i32, i32, i32) {
    %c0_i32 = arith.constant 0 : i32
    %c0_i32_0 = arith.constant 0 : i32
    %c0_i32_1 = arith.constant 0 : i32
    return %arg0, %c0_i32, %c0_i32_0 : i32, i32, i32
  }
}

module attributes {stable_mosaic.version = 11 : i64} {
  func.func @_encoder_layer_kernel(%arg0: i32, %arg1: memref<1x5x32xf32, #tpu.memory_space<vmem>>, %arg2: memref<1x32xf32, #tpu.memory_space<vmem>>, %arg3: memref<1x32xf32, #tpu.memory_space<vmem>>, %arg4: memref<32x96xbf16, #tpu.memory_space<vmem>>, %arg5: memref<1x96xf32, #tpu.memory_space<vmem>>, %arg6: memref<32x32xbf16, #tpu.memory_space<vmem>>, %arg7: memref<1x32xf32, #tpu.memory_space<vmem>>, %arg8: memref<1x32xf32, #tpu.memory_space<vmem>>, %arg9: memref<1x32xf32, #tpu.memory_space<vmem>>, %arg10: memref<32x64xbf16, #tpu.memory_space<vmem>>, %arg11: memref<1x64xf32, #tpu.memory_space<vmem>>, %arg12: memref<64x32xbf16, #tpu.memory_space<vmem>>, %arg13: memref<1x32xf32, #tpu.memory_space<vmem>>, %arg14: memref<1x5x32xf32, #tpu.memory_space<vmem>>) attributes {dimension_semantics = [#tpu.dimension_semantics<parallel>], iteration_bounds = array<i64: 2>, scalar_prefetch = 0 : i64, scratch_operands = 0 : i64, tpu.core_type = #tpu.core_type<tc>, window_params = [{transform_indices = @transform_0, window_bounds = array<i64: 1, 5, 32>}, {pipeline_mode = #tpu.pipeline_mode<synchronous>, transform_indices = @transform_1, window_bounds = array<i64: 1, 32>}, {pipeline_mode = #tpu.pipeline_mode<synchronous>, transform_indices = @transform_2, window_bounds = array<i64: 1, 32>}, {pipeline_mode = #tpu.pipeline_mode<synchronous>, transform_indices = @transform_3, window_bounds = array<i64: 32, 96>}, {pipeline_mode = #tpu.pipeline_mode<synchronous>, transform_indices = @transform_4, window_bounds = array<i64: 1, 96>}, {pipeline_mode = #tpu.pipeline_mode<synchronous>, transform_indices = @transform_5, window_bounds = array<i64: 32, 32>}, {pipeline_mode = #tpu.pipeline_mode<synchronous>, transform_indices = @transform_6, window_bounds = array<i64: 1, 32>}, {pipeline_mode = #tpu.pipeline_mode<synchronous>, transform_indices = @transform_7, window_bounds = array<i64: 1, 32>}, {pipeline_mode = #tpu.pipeline_mode<synchronous>, transform_indices = @transform_8, window_bounds = array<i64: 1, 32>}, {pipeline_mode = #tpu.pipeline_mode<synchronous>, transform_indices = @transform_9, window_bounds = array<i64: 32, 64>}, {pipeline_mode = #tpu.pipeline_mode<synchronous>, transform_indices = @transform_10, window_bounds = array<i64: 1, 64>}, {pipeline_mode = #tpu.pipeline_mode<synchronous>, transform_indices = @transform_11, window_bounds = array<i64: 64, 32>}, {pipeline_mode = #tpu.pipeline_mode<synchronous>, transform_indices = @transform_12, window_bounds = array<i64: 1, 32>}, {transform_indices = @transform_13, window_bounds = array<i64: 1, 5, 32>}]} {
    %c0 = arith.constant 0 : index
    %c0_0 = arith.constant 0 : index
    %c0_1 = arith.constant 0 : index
    %0 = vector.load %arg1[%c0, %c0_0, %c0_1] : memref<1x5x32xf32, #tpu.memory_space<vmem>>, vector<1x5x32xf32>
    %1 = vector.shape_cast %0 : vector<1x5x32xf32> to vector<5x32xf32>
    %cst = arith.constant dense<0.000000e+00> : vector<5xf32>
    %2 = vector.multi_reduction <add>, %1, %cst [1] : vector<5x32xf32> to vector<5xf32>
    %3 = vector.shape_cast %2 : vector<5xf32> to vector<5x1xf32>
    %cst_2 = arith.constant 3.200000e+01 : f32
    %4 = vector.broadcast %cst_2 : f32 to vector<5x1xf32>
    %5 = arith.divf %3, %4 : vector<5x1xf32>
    %6 = vector.broadcast %5 : vector<5x1xf32> to vector<5x32xf32>
    %7 = arith.subf %1, %6 : vector<5x32xf32>
    %8 = arith.mulf %7, %7 : vector<5x32xf32>
    %cst_3 = arith.constant dense<0.000000e+00> : vector<5xf32>
    %9 = vector.multi_reduction <add>, %8, %cst_3 [1] : vector<5x32xf32> to vector<5xf32>
    %10 = vector.shape_cast %9 : vector<5xf32> to vector<5x1xf32>
    %cst_4 = arith.constant 3.200000e+01 : f32
    %11 = vector.broadcast %cst_4 : f32 to vector<5x1xf32>
    %12 = arith.divf %10, %11 : vector<5x1xf32>
    %cst_5 = arith.constant 9.99999974E-6 : f32
    %13 = vector.broadcast %cst_5 : f32 to vector<5x1xf32>
    %14 = arith.addf %12, %13 : vector<5x1xf32>
    %15 = math.rsqrt %14 : vector<5x1xf32>
    %16 = vector.broadcast %15 : vector<5x1xf32> to vector<5x32xf32>
    %17 = arith.mulf %7, %16 : vector<5x32xf32>
    %c0_6 = arith.constant 0 : index
    %c0_7 = arith.constant 0 : index
    %18 = vector.load %arg2[%c0_6, %c0_7] : memref<1x32xf32, #tpu.memory_space<vmem>>, vector<1x32xf32>
    %19 = vector.broadcast %18 : vector<1x32xf32> to vector<5x32xf32>
    %20 = arith.mulf %17, %19 : vector<5x32xf32>
    %c0_8 = arith.constant 0 : index
    %c0_9 = arith.constant 0 : index
    %21 = vector.load %arg3[%c0_8, %c0_9] : memref<1x32xf32, #tpu.memory_space<vmem>>, vector<1x32xf32>
    %22 = vector.broadcast %21 : vector<1x32xf32> to vector<5x32xf32>
    %23 = arith.addf %20, %22 : vector<5x32xf32>
    %24 = arith.truncf %23 : vector<5x32xf32> to vector<5x32xbf16>
    %c0_10 = arith.constant 0 : index
    %c0_11 = arith.constant 0 : index
    %25 = vector.load %arg4[%c0_10, %c0_11] : memref<32x96xbf16, #tpu.memory_space<vmem>>, vector<32x96xbf16>
    %cst_12 = arith.constant dense<0.000000e+00> : vector<5x96xf32>
    %26 = tpu.matmul %24, %25, %cst_12 {dimension_numbers = #tpu.dot_dimension_numbers<[1], [0], [0], [1], [0, 0, 1, 1], [], []>} : vector<5x32xbf16>, vector<32x96xbf16>, vector<5x96xf32> -> vector<5x96xf32>
    %c0_13 = arith.constant 0 : index
    %c0_14 = arith.constant 0 : index
    %27 = vector.load %arg5[%c0_13, %c0_14] : memref<1x96xf32, #tpu.memory_space<vmem>>, vector<1x96xf32>
    %28 = vector.broadcast %27 : vector<1x96xf32> to vector<5x96xf32>
    %29 = arith.addf %26, %28 : vector<5x96xf32>
    %30 = vector.extract_strided_slice %29 {offsets = [0, 0], sizes = [5, 32], strides = [1, 1]} : vector<5x96xf32> to vector<5x32xf32>
    %cst_15 = arith.constant 0.353553385 : f32
    %31 = vector.broadcast %cst_15 : f32 to vector<5x32xf32>
    %32 = arith.mulf %30, %31 : vector<5x32xf32>
    %33 = vector.extract_strided_slice %29 {offsets = [0, 32], sizes = [5, 32], strides = [1, 1]} : vector<5x96xf32> to vector<5x32xf32>
    %34 = vector.extract_strided_slice %29 {offsets = [0, 64], sizes = [5, 32], strides = [1, 1]} : vector<5x96xf32> to vector<5x32xf32>
    %35 = vector.extract_strided_slice %32 {offsets = [0, 0], sizes = [5, 8], strides = [1, 1]} : vector<5x32xf32> to vector<5x8xf32>
    %36 = vector.extract_strided_slice %33 {offsets = [0, 0], sizes = [5, 8], strides = [1, 1]} : vector<5x32xf32> to vector<5x8xf32>
    %37 = vector.extract_strided_slice %34 {offsets = [0, 0], sizes = [5, 8], strides = [1, 1]} : vector<5x32xf32> to vector<5x8xf32>
    %cst_16 = arith.constant dense<0.000000e+00> : vector<5x5xf32>
    %38 = tpu.matmul %35, %36, %cst_16 {dimension_numbers = #tpu.dot_dimension_numbers<[1], [1], [0], [0], [0, 0, 1, 0], [], []>} : vector<5x8xf32>, vector<5x8xf32>, vector<5x5xf32> -> vector<5x5xf32>
    %cst_17 = arith.constant dense<0xFF800000> : vector<5xf32>
    %39 = vector.multi_reduction <maximumf>, %38, %cst_17 [1] : vector<5x5xf32> to vector<5xf32>
    %40 = vector.shape_cast %39 : vector<5xf32> to vector<5x1xf32>
    %41 = vector.broadcast %40 : vector<5x1xf32> to vector<5x5xf32>
    %42 = arith.subf %38, %41 : vector<5x5xf32>
    %43 = math.exp %42 : vector<5x5xf32>
    %cst_18 = arith.constant dense<0.000000e+00> : vector<5xf32>
    %44 = vector.multi_reduction <add>, %43, %cst_18 [1] : vector<5x5xf32> to vector<5xf32>
    %45 = vector.shape_cast %44 : vector<5xf32> to vector<5x1xf32>
    %46 = tpu.reciprocal %45 {approx = true} : vector<5x1xf32> -> vector<5x1xf32>
    %47 = vector.broadcast %46 : vector<5x1xf32> to vector<5x5xf32>
    %48 = arith.mulf %43, %47 : vector<5x5xf32>
    %cst_19 = arith.constant dense<0.000000e+00> : vector<5x8xf32>
    %49 = tpu.matmul %48, %37, %cst_19 {dimension_numbers = #tpu.dot_dimension_numbers<[1], [0], [0], [1], [0, 0, 1, 1], [], []>} : vector<5x5xf32>, vector<5x8xf32>, vector<5x8xf32> -> vector<5x8xf32>
    %50 = vector.extract_strided_slice %32 {offsets = [0, 8], sizes = [5, 8], strides = [1, 1]} : vector<5x32xf32> to vector<5x8xf32>
    %51 = vector.extract_strided_slice %33 {offsets = [0, 8], sizes = [5, 8], strides = [1, 1]} : vector<5x32xf32> to vector<5x8xf32>
    %52 = vector.extract_strided_slice %34 {offsets = [0, 8], sizes = [5, 8], strides = [1, 1]} : vector<5x32xf32> to vector<5x8xf32>
    %cst_20 = arith.constant dense<0.000000e+00> : vector<5x5xf32>
    %53 = tpu.matmul %50, %51, %cst_20 {dimension_numbers = #tpu.dot_dimension_numbers<[1], [1], [0], [0], [0, 0, 1, 0], [], []>} : vector<5x8xf32>, vector<5x8xf32>, vector<5x5xf32> -> vector<5x5xf32>
    %cst_21 = arith.constant dense<0xFF800000> : vector<5xf32>
    %54 = vector.multi_reduction <maximumf>, %53, %cst_21 [1] : vector<5x5xf32> to vector<5xf32>
    %55 = vector.shape_cast %54 : vector<5xf32> to vector<5x1xf32>
    %56 = vector.broadcast %55 : vector<5x1xf32> to vector<5x5xf32>
    %57 = arith.subf %53, %56 : vector<5x5xf32>
    %58 = math.exp %57 : vector<5x5xf32>
    %cst_22 = arith.constant dense<0.000000e+00> : vector<5xf32>
    %59 = vector.multi_reduction <add>, %58, %cst_22 [1] : vector<5x5xf32> to vector<5xf32>
    %60 = vector.shape_cast %59 : vector<5xf32> to vector<5x1xf32>
    %61 = tpu.reciprocal %60 {approx = true} : vector<5x1xf32> -> vector<5x1xf32>
    %62 = vector.broadcast %61 : vector<5x1xf32> to vector<5x5xf32>
    %63 = arith.mulf %58, %62 : vector<5x5xf32>
    %cst_23 = arith.constant dense<0.000000e+00> : vector<5x8xf32>
    %64 = tpu.matmul %63, %52, %cst_23 {dimension_numbers = #tpu.dot_dimension_numbers<[1], [0], [0], [1], [0, 0, 1, 1], [], []>} : vector<5x5xf32>, vector<5x8xf32>, vector<5x8xf32> -> vector<5x8xf32>
    %65 = vector.extract_strided_slice %32 {offsets = [0, 16], sizes = [5, 8], strides = [1, 1]} : vector<5x32xf32> to vector<5x8xf32>
    %66 = vector.extract_strided_slice %33 {offsets = [0, 16], sizes = [5, 8], strides = [1, 1]} : vector<5x32xf32> to vector<5x8xf32>
    %67 = vector.extract_strided_slice %34 {offsets = [0, 16], sizes = [5, 8], strides = [1, 1]} : vector<5x32xf32> to vector<5x8xf32>
    %cst_24 = arith.constant dense<0.000000e+00> : vector<5x5xf32>
    %68 = tpu.matmul %65, %66, %cst_24 {dimension_numbers = #tpu.dot_dimension_numbers<[1], [1], [0], [0], [0, 0, 1, 0], [], []>} : vector<5x8xf32>, vector<5x8xf32>, vector<5x5xf32> -> vector<5x5xf32>
    %cst_25 = arith.constant dense<0xFF800000> : vector<5xf32>
    %69 = vector.multi_reduction <maximumf>, %68, %cst_25 [1] : vector<5x5xf32> to vector<5xf32>
    %70 = vector.shape_cast %69 : vector<5xf32> to vector<5x1xf32>
    %71 = vector.broadcast %70 : vector<5x1xf32> to vector<5x5xf32>
    %72 = arith.subf %68, %71 : vector<5x5xf32>
    %73 = math.exp %72 : vector<5x5xf32>
    %cst_26 = arith.constant dense<0.000000e+00> : vector<5xf32>
    %74 = vector.multi_reduction <add>, %73, %cst_26 [1] : vector<5x5xf32> to vector<5xf32>
    %75 = vector.shape_cast %74 : vector<5xf32> to vector<5x1xf32>
    %76 = tpu.reciprocal %75 {approx = true} : vector<5x1xf32> -> vector<5x1xf32>
    %77 = vector.broadcast %76 : vector<5x1xf32> to vector<5x5xf32>
    %78 = arith.mulf %73, %77 : vector<5x5xf32>
    %cst_27 = arith.constant dense<0.000000e+00> : vector<5x8xf32>
    %79 = tpu.matmul %78, %67, %cst_27 {dimension_numbers = #tpu.dot_dimension_numbers<[1], [0], [0], [1], [0, 0, 1, 1], [], []>} : vector<5x5xf32>, vector<5x8xf32>, vector<5x8xf32> -> vector<5x8xf32>
    %80 = vector.extract_strided_slice %32 {offsets = [0, 24], sizes = [5, 8], strides = [1, 1]} : vector<5x32xf32> to vector<5x8xf32>
    %81 = vector.extract_strided_slice %33 {offsets = [0, 24], sizes = [5, 8], strides = [1, 1]} : vector<5x32xf32> to vector<5x8xf32>
    %82 = vector.extract_strided_slice %34 {offsets = [0, 24], sizes = [5, 8], strides = [1, 1]} : vector<5x32xf32> to vector<5x8xf32>
    %cst_28 = arith.constant dense<0.000000e+00> : vector<5x5xf32>
    %83 = tpu.matmul %80, %81, %cst_28 {dimension_numbers = #tpu.dot_dimension_numbers<[1], [1], [0], [0], [0, 0, 1, 0], [], []>} : vector<5x8xf32>, vector<5x8xf32>, vector<5x5xf32> -> vector<5x5xf32>
    %cst_29 = arith.constant dense<0xFF800000> : vector<5xf32>
    %84 = vector.multi_reduction <maximumf>, %83, %cst_29 [1] : vector<5x5xf32> to vector<5xf32>
    %85 = vector.shape_cast %84 : vector<5xf32> to vector<5x1xf32>
    %86 = vector.broadcast %85 : vector<5x1xf32> to vector<5x5xf32>
    %87 = arith.subf %83, %86 : vector<5x5xf32>
    %88 = math.exp %87 : vector<5x5xf32>
    %cst_30 = arith.constant dense<0.000000e+00> : vector<5xf32>
    %89 = vector.multi_reduction <add>, %88, %cst_30 [1] : vector<5x5xf32> to vector<5xf32>
    %90 = vector.shape_cast %89 : vector<5xf32> to vector<5x1xf32>
    %91 = tpu.reciprocal %90 {approx = true} : vector<5x1xf32> -> vector<5x1xf32>
    %92 = vector.broadcast %91 : vector<5x1xf32> to vector<5x5xf32>
    %93 = arith.mulf %88, %92 : vector<5x5xf32>
    %cst_31 = arith.constant dense<0.000000e+00> : vector<5x8xf32>
    %94 = tpu.matmul %93, %82, %cst_31 {dimension_numbers = #tpu.dot_dimension_numbers<[1], [0], [0], [1], [0, 0, 1, 1], [], []>} : vector<5x5xf32>, vector<5x8xf32>, vector<5x8xf32> -> vector<5x8xf32>
    %95 = tpu.concatenate %49, %64, %79, %94 in 1 : vector<5x8xf32>, vector<5x8xf32>, vector<5x8xf32>, vector<5x8xf32> -> vector<5x32xf32>
    %96 = arith.truncf %95 : vector<5x32xf32> to vector<5x32xbf16>
    %c0_32 = arith.constant 0 : index
    %c0_33 = arith.constant 0 : index
    %97 = vector.load %arg6[%c0_32, %c0_33] : memref<32x32xbf16, #tpu.memory_space<vmem>>, vector<32x32xbf16>
    %cst_34 = arith.constant dense<0.000000e+00> : vector<5x32xf32>
    %98 = tpu.matmul %96, %97, %cst_34 {dimension_numbers = #tpu.dot_dimension_numbers<[1], [0], [0], [1], [0, 0, 1, 1], [], []>} : vector<5x32xbf16>, vector<32x32xbf16>, vector<5x32xf32> -> vector<5x32xf32>
    %99 = arith.addf %1, %98 : vector<5x32xf32>
    %c0_35 = arith.constant 0 : index
    %c0_36 = arith.constant 0 : index
    %100 = vector.load %arg7[%c0_35, %c0_36] : memref<1x32xf32, #tpu.memory_space<vmem>>, vector<1x32xf32>
    %101 = vector.broadcast %100 : vector<1x32xf32> to vector<5x32xf32>
    %102 = arith.addf %99, %101 : vector<5x32xf32>
    %cst_37 = arith.constant dense<0.000000e+00> : vector<5xf32>
    %103 = vector.multi_reduction <add>, %102, %cst_37 [1] : vector<5x32xf32> to vector<5xf32>
    %104 = vector.shape_cast %103 : vector<5xf32> to vector<5x1xf32>
    %cst_38 = arith.constant 3.200000e+01 : f32
    %105 = vector.broadcast %cst_38 : f32 to vector<5x1xf32>
    %106 = arith.divf %104, %105 : vector<5x1xf32>
    %107 = vector.broadcast %106 : vector<5x1xf32> to vector<5x32xf32>
    %108 = arith.subf %102, %107 : vector<5x32xf32>
    %109 = arith.mulf %108, %108 : vector<5x32xf32>
    %cst_39 = arith.constant dense<0.000000e+00> : vector<5xf32>
    %110 = vector.multi_reduction <add>, %109, %cst_39 [1] : vector<5x32xf32> to vector<5xf32>
    %111 = vector.shape_cast %110 : vector<5xf32> to vector<5x1xf32>
    %cst_40 = arith.constant 3.200000e+01 : f32
    %112 = vector.broadcast %cst_40 : f32 to vector<5x1xf32>
    %113 = arith.divf %111, %112 : vector<5x1xf32>
    %cst_41 = arith.constant 9.99999974E-6 : f32
    %114 = vector.broadcast %cst_41 : f32 to vector<5x1xf32>
    %115 = arith.addf %113, %114 : vector<5x1xf32>
    %116 = math.rsqrt %115 : vector<5x1xf32>
    %117 = vector.broadcast %116 : vector<5x1xf32> to vector<5x32xf32>
    %118 = arith.mulf %108, %117 : vector<5x32xf32>
    %c0_42 = arith.constant 0 : index
    %c0_43 = arith.constant 0 : index
    %119 = vector.load %arg8[%c0_42, %c0_43] : memref<1x32xf32, #tpu.memory_space<vmem>>, vector<1x32xf32>
    %120 = vector.broadcast %119 : vector<1x32xf32> to vector<5x32xf32>
    %121 = arith.mulf %118, %120 : vector<5x32xf32>
    %c0_44 = arith.constant 0 : index
    %c0_45 = arith.constant 0 : index
    %122 = vector.load %arg9[%c0_44, %c0_45] : memref<1x32xf32, #tpu.memory_space<vmem>>, vector<1x32xf32>
    %123 = vector.broadcast %122 : vector<1x32xf32> to vector<5x32xf32>
    %124 = arith.addf %121, %123 : vector<5x32xf32>
    %125 = arith.truncf %124 : vector<5x32xf32> to vector<5x32xbf16>
    %c0_46 = arith.constant 0 : index
    %c0_47 = arith.constant 0 : index
    %126 = vector.load %arg10[%c0_46, %c0_47] : memref<32x64xbf16, #tpu.memory_space<vmem>>, vector<32x64xbf16>
    %cst_48 = arith.constant dense<0.000000e+00> : vector<5x64xf32>
    %127 = tpu.matmul %125, %126, %cst_48 {dimension_numbers = #tpu.dot_dimension_numbers<[1], [0], [0], [1], [0, 0, 1, 1], [], []>} : vector<5x32xbf16>, vector<32x64xbf16>, vector<5x64xf32> -> vector<5x64xf32>
    %c0_49 = arith.constant 0 : index
    %c0_50 = arith.constant 0 : index
    %128 = vector.load %arg11[%c0_49, %c0_50] : memref<1x64xf32, #tpu.memory_space<vmem>>, vector<1x64xf32>
    %129 = vector.broadcast %128 : vector<1x64xf32> to vector<5x64xf32>
    %130 = arith.addf %127, %129 : vector<5x64xf32>
    %cst_51 = arith.constant 1.702000e+00 : f32
    %131 = vector.broadcast %cst_51 : f32 to vector<5x64xf32>
    %132 = arith.mulf %131, %130 : vector<5x64xf32>
    %133 = arith.negf %132 : vector<5x64xf32>
    %134 = math.exp %133 : vector<5x64xf32>
    %cst_52 = arith.constant 1.000000e+00 : f32
    %135 = vector.broadcast %cst_52 : f32 to vector<5x64xf32>
    %136 = arith.addf %135, %134 : vector<5x64xf32>
    %137 = arith.divf %135, %136 : vector<5x64xf32>
    %138 = arith.mulf %130, %137 : vector<5x64xf32>
    %139 = arith.truncf %138 : vector<5x64xf32> to vector<5x64xbf16>
    %c0_53 = arith.constant 0 : index
    %c0_54 = arith.constant 0 : index
    %140 = vector.load %arg12[%c0_53, %c0_54] : memref<64x32xbf16, #tpu.memory_space<vmem>>, vector<64x32xbf16>
    %cst_55 = arith.constant dense<0.000000e+00> : vector<5x32xf32>
    %141 = tpu.matmul %139, %140, %cst_55 {dimension_numbers = #tpu.dot_dimension_numbers<[1], [0], [0], [1], [0, 0, 1, 1], [], []>} : vector<5x64xbf16>, vector<64x32xbf16>, vector<5x32xf32> -> vector<5x32xf32>
    %142 = arith.addf %102, %141 : vector<5x32xf32>
    %c0_56 = arith.constant 0 : index
    %c0_57 = arith.constant 0 : index
    %143 = vector.load %arg13[%c0_56, %c0_57] : memref<1x32xf32, #tpu.memory_space<vmem>>, vector<1x32xf32>
    %144 = vector.broadcast %143 : vector<1x32xf32> to vector<5x32xf32>
    %145 = arith.addf %142, %144 : vector<5x32xf32>
    %c0_58 = arith.constant 0 : index
    %c0_59 = arith.constant 0 : index
    %c0_60 = arith.constant 0 : index
    %146 = vector.load %arg14[%c0_58, %c0_59, %c0_60] : memref<1x5x32xf32, #tpu.memory_space<vmem>>, vector<1x5x32xf32>
    %147 = vector.shape_cast %146 : vector<1x5x32xf32> to vector<5x32xf32>
    %148 = vector.shape_cast %145 : vector<5x32xf32> to vector<1x5x32xf32>
    tpu.vector_store %arg14[%c0_58, %c0_59, %c0_60], %148 {strides = array<i32>} : memref<1x5x32xf32, #tpu.memory_space<vmem>>, vector<1x5x32xf32>,
    return
  }
  func.func @transform_0(%arg0: i32) -> (i32, i32, i32) {
    %c0_i32 = arith.constant 0 : i32
    %c0_i32_0 = arith.constant 0 : i32
    %c0_i32_1 = arith.constant 0 : i32
    return %arg0, %c0_i32, %c0_i32_0 : i32, i32, i32
  }
  func.func @transform_1(%arg0: i32) -> (i32, i32) {
    %c0_i32 = arith.constant 0 : i32
    %c0_i32_0 = arith.constant 0 : i32
    %c0_i32_1 = arith.constant 0 : i32
    return %c0_i32, %c0_i32_0 : i32, i32
  }
  func.func @transform_2(%arg0: i32) -> (i32, i32) {
    %c0_i32 = arith.constant 0 : i32
    %c0_i32_0 = arith.constant 0 : i32
    %c0_i32_1 = arith.constant 0 : i32
    return %c0_i32, %c0_i32_0 : i32, i32
  }
  func.func @transform_3(%arg0: i32) -> (i32, i32) {
    %c0_i32 = arith.constant 0 : i32
    %c0_i32_0 = arith.constant 0 : i32
    %c0_i32_1 = arith.constant 0 : i32
    return %c0_i32, %c0_i32_0 : i32, i32
  }
  func.func @transform_4(%arg0: i32) -> (i32, i32) {
    %c0_i32 = arith.constant 0 : i32
    %c0_i32_0 = arith.constant 0 : i32
    %c0_i32_1 = arith.constant 0 : i32
    return %c0_i32, %c0_i32_0 : i32, i32
  }
  func.func @transform_5(%arg0: i32) -> (i32, i32) {
    %c0_i32 = arith.constant 0 : i32
    %c0_i32_0 = arith.constant 0 : i32
    %c0_i32_1 = arith.constant 0 : i32
    return %c0_i32, %c0_i32_0 : i32, i32
  }
  func.func @transform_6(%arg0: i32) -> (i32, i32) {
    %c0_i32 = arith.constant 0 : i32
    %c0_i32_0 = arith.constant 0 : i32
    %c0_i32_1 = arith.constant 0 : i32
    return %c0_i32, %c0_i32_0 : i32, i32
  }
  func.func @transform_7(%arg0: i32) -> (i32, i32) {
    %c0_i32 = arith.constant 0 : i32
    %c0_i32_0 = arith.constant 0 : i32
    %c0_i32_1 = arith.constant 0 : i32
    return %c0_i32, %c0_i32_0 : i32, i32
  }
  func.func @transform_8(%arg0: i32) -> (i32, i32) {
    %c0_i32 = arith.constant 0 : i32
    %c0_i32_0 = arith.constant 0 : i32
    %c0_i32_1 = arith.constant 0 : i32
    return %c0_i32, %c0_i32_0 : i32, i32
  }
  func.func @transform_9(%arg0: i32) -> (i32, i32) {
    %c0_i32 = arith.constant 0 : i32
    %c0_i32_0 = arith.constant 0 : i32
    %c0_i32_1 = arith.constant 0 : i32
    return %c0_i32, %c0_i32_0 : i32, i32
  }
  func.func @transform_10(%arg0: i32) -> (i32, i32) {
    %c0_i32 = arith.constant 0 : i32
    %c0_i32_0 = arith.constant 0 : i32
    %c0_i32_1 = arith.constant 0 : i32
    return %c0_i32, %c0_i32_0 : i32, i32
  }
  func.func @transform_11(%arg0: i32) -> (i32, i32) {
    %c0_i32 = arith.constant 0 : i32
    %c0_i32_0 = arith.constant 0 : i32
    %c0_i32_1 = arith.constant 0 : i32
    return %c0_i32, %c0_i32_0 : i32, i32
  }
  func.func @transform_12(%arg0: i32) -> (i32, i32) {
    %c0_i32 = arith.constant 0 : i32
    %c0_i32_0 = arith.constant 0 : i32
    %c0_i32_1 = arith.constant 0 : i32
    return %c0_i32, %c0_i32_0 : i32, i32
  }
  func.func @transform_13(%arg0: i32) -> (i32, i32, i32) {
    %c0_i32 = arith.constant 0 : i32
    %c0_i32_0 = arith.constant 0 : i32
    %c0_i32_1 = arith.constant 0 : i32
    return %arg0, %c0_i32, %c0_i32_0 : i32, i32, i32
  }
}

</mosaic_0001>

<bundles_post_ra>
// kernel: _tower_features.2
= control target key start
LH: loop header
LB: loop body
LE: loop exit
PB: predicated region body
PF: predicated region fallthrough
CT: control target
= control target key end

     0   :  { %s584_s21 = smov 0   ;;  %s659_s0 = inlined_call_operand.vmem [shape: f32[2,4,192], index: 0, kind: input, shape index: {}]   ;;  %s660_s1 = inlined_call_operand.vmem [shape: bf16[192,32], index: 1, kind: input, shape index: {}]   ;;  %s661_s2 = inlined_call_operand.vmem [shape: f32[1,32], index: 2, kind: input, shape index: {}]   ;;  %s662_s3 = inlined_call_operand.vmem [shape: f32[5,32], index: 3, kind: input, shape index: {}]   ;;  %s663_s4 = inlined_call_operand.vmem [shape: f32[1,32], index: 4, kind: input, shape index: {}]   ;;  %s664_s5 = inlined_call_operand.vmem [shape: f32[1,32], index: 5, kind: input, shape index: {}]   ;;  %s665_s6 = inlined_call_operand.vmem [shape: f32[2,5,32], index: 6, kind: output, shape index: {}]  }
   0x1 LB: > { %s490_s22 = sadd.s32 4294967295, %s546_s21   ;;  %p494_p0 = scmp.ge.s32.totalorder %s546_s21, 1  ;;  %s546_s21 = sphi %s584_s21, %s16_s21  }
   0x2   : > { %p212_p1 = scmp.lt.s32.totalorder %s546_s21, 3 }
   0x4   : > { %p213_p2 = pnand %p494_p0, %p212_p1 }
   0x5   : > { %v525_v0 = vld [vmem:[%s660_s1] sm:$0xff] (!%p213_p2)   ;;  %v548_v1 = vmov (!%p213_p2), 0   ;;  %p241_p3 = scmp.lt.s32.totalorder (!%p213_p2), %s490_s22, 1  ;;  %v526_v2 = vld [vmem:[%s660_s1 + $0x8] sm:$0xff] (!%p213_p2)   ;;  %v527_v3 = vld [vmem:[%s660_s1 + $0x10] sm:$0xff] (!%p213_p2)   ;;  %vm353_vm0 = vcmask (!%p213_p2), 523264  }
   0x6   : > { %216 = sbr.rel (%p213_p2) target bundleno = 585 (0x249), region = 44  ;;  %357 = vmatprep.subr.bf16.mxu0 (!%p213_p2), %v548_v1  ;;  %v528_v4 = vld [vmem:[%s660_s1 + $0x18] sm:$0xff] (!%p213_p2)   ;;  %v529_v7 = vld [vmem:[%s660_s1 + $0x20] sm:$0xff] (!%p213_p2)   ;;  %v530_v9 = vld [vmem:[%s660_s1 + $0x28] sm:$0xff] (!%p213_p2)   ;;  %vm401_vm1 = vcmask (!%p213_p2), 1040384   ;;  %vm405_vm2 = vcmask (!%p213_p2), 258048  }
   0x7   : > { %358 = vmatpush1.bf16.msra.mxu0 (!%p213_p2), %v525_v0  ;;  %v531_v10 = vld [vmem:[%s660_s1 + $0x30] sm:$0xff] (!%p213_p2)   ;;  %v532_v11 = vld [vmem:[%s660_s1 + $0x38] sm:$0xff] (!%p213_p2)   ;;  %v533_v12 = vld [vmem:[%s660_s1 + $0x40] sm:$0xff] (!%p213_p2)  }
   0x8   : > { %359 = vmatprep.subr.bf16.mxu0 (!%p213_p2), %v548_v1  ;;  %v534_v13 = vld [vmem:[%s660_s1 + $0x48] sm:$0xff] (!%p213_p2)   ;;  %v535_v14 = vld [vmem:[%s660_s1 + $0x50] sm:$0xff] (!%p213_p2)   ;;  %v536_v15 = vld [vmem:[%s660_s1 + $0x58] sm:$0xff] (!%p213_p2)  }
   0x9   : > { %v397_v18 = vld [vmem:[%s661_s2] sm:$0x1] (!%p213_p2) }
   0xa   : > { %v403_v21 = vld [vmem:[%s662_s3] sm:$0x1f] (!%p213_p2) }
   0xb   : > { %360 = vmatpush1.bf16.msra.mxu0 (!%p213_p2), %v526_v2  ;;  %v511_v36 = vld [vmem:[%s663_s4] ss:$0 sm:$0xff] (!%p213_p2) }
   0xc   : > { %361 = vmatprep.subr.bf16.mxu0 (!%p213_p2), %v548_v1  ;;  %v512_v38 = vld [vmem:[%s664_s5] ss:$0 sm:$0xff] (!%p213_p2) }
   0xd   : > { %s667_s22 = smov (!%p241_p3, %s490_s22), 1 }
   0xe   : > { %s515_s29 = sshll.u32 %s667_s22, 3 }
   0xf   : > { %s245_s8 = scalar_lea.vmem %s659_s0, %s515_s29  ;;  %362 = vmatpush1.bf16.msra.mxu0 %v527_v3  ;;  %s249_s16 = scalar_lea.vmem %s665_s6, %s515_s29 }
  0x10   : > { %363 = vmatprep.subr.bf16.mxu0 %v548_v1  ;;  %v251_v5 = vld [vmem:[%s245_s8] sm:$0xff] }
  0x11   : > { %v253_v6 = vcombine.high %v251_v5, %v251_v5  ;;  %v255_v16 = vpack.c.bf16 %v251_v5, %v251_v5 }
  0x13   : > { %364 = vmatpush1.bf16.msra.mxu0 %v528_v4  ;;  %v256_v8 = vpack.c.bf16 %v253_v6, %v253_v6 }
  0x14   : > { %365 = vmatprep.subr.bf16.mxu0 %v548_v1 }
  0x15   : > { %510 = vmatprep.mubr.msk.bf16.mxu0 %vm353_vm0, %v256_v8 }
  0x17   : > { %366 = vmatpush1.bf16.msra.mxu0 %v529_v7 }
  0x18   : > { %367 = vmatprep.subr.bf16.mxu0 %v548_v1 }
  0x1b   : > { %368 = vmatpush1.bf16.msra.mxu0 %v530_v9 }
  0x1c   : > { %369 = vmatprep.subr.bf16.mxu0 %v548_v1 }
  0x1f   : > { %370 = vmatpush1.bf16.msra.mxu0 %v531_v10 }
  0x20   : > { %371 = vmatprep.subr.bf16.mxu0 %v548_v1 }
  0x23   : > { %372 = vmatpush1.bf16.msra.mxu0 %v532_v11 }
  0x24   : > { %373 = vmatprep.subr.bf16.mxu0 %v548_v1 }
  0x27   : > { %374 = vmatpush1.bf16.msra.mxu0 %v533_v12 }
  0x28   : > { %375 = vmatprep.subr.bf16.mxu0 %v548_v1 }
  0x2b   : > { %376 = vmatpush1.bf16.msra.mxu0 %v534_v13 }
  0x2c   : > { %377 = vmatprep.subr.bf16.mxu0 %v548_v1 }
  0x2f   : > { %378 = vmatpush1.bf16.msra.mxu0 %v535_v14 }
  0x30   : > { %379 = vmatprep.subr.bf16.mxu0 %v548_v1 }
  0x33   : > { %380 = vmatpush1.bf16.msra.mxu0 %v536_v15 }
  0x36   : > { %390 = vmatmul.mubr.bf16.vlgmr.msra.gmra.mrb[0].mxu0 %v255_v16 }
 0x109   : > { %v391_v17 = vpop.f32.mrb[0].mxu0 }
 0x10a   : > { %v399_v19 = vrot.slane %v391_v17, 7  ;;  %v393_v20 = vpop.f32.mrb[1].mxu0 }
 0x10b   : > { %v394_v22 = vpop.f32.mrb[2].mxu0 }
 0x10c   : > { %v395_v23 = vpop.f32.mrb[3].mxu0  ;;  %v402_v24 = vsel %vm401_vm1, %v397_v18, %v399_v19 }
 0x10d   : > { %v404_v25 = vadd.f32 %v403_v21, %v402_v24 }
 0x10f   : > { %v406_v26 = vsel %vm405_vm2, %v404_v25, 0.0 }
 0x110   : > { %407 = vadd.xlane.f32.xlu0 %v406_v26 }
 0x19d   : > { %v408_v27 = vpop.xlane.xlu0 %407 }
 0x19e   : > { %v410_v28 = vmul.f32 0.03125, %v408_v27 }
 0x1a0   : > { %v411_v29 = vsub.f32 %v404_v25, %v410_v28 }
 0x1a2   : > { %v412_v30 = vmul.f32 %v411_v29, %v411_v29 }
 0x1a4   : > { %v413_v31 = vsel %vm405_vm2, %v412_v30, 0.0 }
 0x1a5   : > { %414 = vadd.xlane.f32.xlu0 %v413_v31 }
 0x232   : > { %v415_v32 = vpop.xlane.xlu0 %414 }
 0x233   : > { %v416_v33 = vmul.f32 0.03125, %v415_v32 }
 0x235   : > { %v417_v34 = vadd.f32 1e-05, %v416_v33 }
 0x237   : > { %538 = vrsqrt.f32 %v417_v34 }
 0x241   : > { %v539_v35 = vpop.eup %538 }
 0x242   : > { %v419_v37 = vmul.f32 %v539_v35, %v411_v29 }
 0x244   : > { %v427_v39 = vmul.f32 %v511_v36, %v419_v37 }
 0x246   : > { %v435_v40 = vadd.f32 %v512_v38, %v427_v39 }
 0x248   : > { %436 = vst.msk [vmem:[%s249_s16] sm:$0x1f] %vm405_vm2, %v435_v40 }
 0x249 PF: > { %s16_s21 = sadd.s32 1, %s546_s21  }
 0x24a   : > { %p13_p4 = scmp.ge.s32.totalorder %s16_s21, 4  }
 0x24c   :  { %15 = sbr.rel (!%p13_p4) target bundleno = 1 (0x1), region = 74 }

// kernel: _tower_features.3
= control target key start
LH: loop header
LB: loop body
LE: loop exit
PB: predicated region body
PF: predicated region fallthrough
CT: control target
= control target key end

     0   :  { %s1842_s25 = smov 0   ;;  %s2014_s0 = inlined_call_operand.vmem [shape: f32[2,5,32], index: 0, kind: input, shape index: {}]   ;;  %s2015_s1 = inlined_call_operand.vmem [shape: f32[1,32], index: 1, kind: input, shape index: {}]   ;;  %s2016_s2 = inlined_call_operand.vmem [shape: f32[1,32], index: 2, kind: input, shape index: {}]   ;;  %s2017_s3 = inlined_call_operand.vmem [shape: bf16[32,96], index: 3, kind: input, shape index: {}]   ;;  %s2018_s4 = inlined_call_operand.vmem [shape: f32[1,96], index: 4, kind: input, shape index: {}]   ;;  %s2019_s5 = inlined_call_operand.vmem [shape: bf16[32,32], index: 5, kind: input, shape index: {}]   ;;  %s2020_s6 = inlined_call_operand.vmem [shape: f32[1,32], index: 6, kind: input, shape index: {}]   ;;  %s2021_s7 = inlined_call_operand.vmem [shape: f32[1,32], index: 7, kind: input, shape index: {}]   ;;  %s2022_s8 = inlined_call_operand.vmem [shape: f32[1,32], index: 8, kind: input, shape index: {}]   ;;  %s2023_s9 = inlined_call_operand.vmem [shape: bf16[32,64], index: 9, kind: input, shape index: {}]   ;;  %s2024_s10 = inlined_call_operand.vmem [shape: f32[1,64], index: 10, kind: input, shape index: {}]   ;;  %s2025_s11 = inlined_call_operand.vmem [shape: bf16[64,32], index: 11, kind: input, shape index: {}]   ;;  %s2026_s12 = inlined_call_operand.vmem [shape: f32[1,32], index: 12, kind: input, shape index: {}]   ;;  %s2027_s13 = inlined_call_operand.vmem [shape: f32[2,5,32], index: 13, kind: output, shape index: {}]  }
   0x1 LB: > { %s1536_s26 = sadd.s32 4294967295, %s1754_s25   ;;  %p1540_p0 = scmp.ge.s32.totalorder %s1754_s25, 1  ;;  %s1754_s25 = sphi %s1842_s25, %s23_s25  }
   0x2   : > { %p386_p1 = scmp.lt.s32.totalorder %s1754_s25, 3 }
   0x4   : > { %p387_p2 = pnand %p1540_p0, %p386_p1 }
   0x5   : > { %p428_p3 = scmp.lt.s32.totalorder (!%p387_p2), %s1536_s26, 1  ;;  %vm438_vm0 = vcmask (!%p387_p2), 258048   ;;  %v1714_v7 = vld [vmem:[%s2017_s3] sm:$0xff] (!%p387_p2)   ;;  %v1756_v8 = vmov (!%p387_p2), 0.0   ;;  %vm1757_vm1 = vmmov (!%p387_p2), 0   ;;  %v1715_v9 = vld [vmem:[%s2017_s3 + $0x8] sm:$0xff] (!%p387_p2)  }
   0x6   : > { %390 = sbr.rel (%p387_p2) target bundleno = 3052 (0xbec), region = 72  ;;  %1614 = vmatprep.subr.bf16.mxu0 (!%p387_p2), %v1756_v8  ;;  %1618 = vmatprep.mubr.msk.bf16.mxu0 (!%p387_p2), %vm1757_vm1, %v1756_v8  ;;  %v1543_v14 = vld [vmem:[%s2015_s1] ss:$0 sm:$0xff] (!%p387_p2)  ;;  %vm493_vm2 = vcmask (!%p387_p2), 261120   ;;  %s1758_s24 = smov (!%p387_p2), 64   ;;  %vm541_vm3 = vcmask (!%p387_p2), 64512  }
   0x7   : > { %1615 = vmatpush3.bf16.msra.mxu0 (!%p387_p2), %v1714_v7  ;;  %1627 = vmatprep.subr.mxu1 (!%p387_p2), %v1756_v8  ;;  %v1544_v16 = vld [vmem:[%s2016_s2] ss:$0 sm:$0xff] (!%p387_p2)  ;;  %s1759_s28 = smov (!%p387_p2), 96   ;;  %s1760_s29 = smov (!%p387_p2), 88   ;;  %vm635_vm4 = vcmask (!%p387_p2), 1044480   ;;  %vm617_vm5 = vcmask (!%p387_p2), 36864  }
   0x8   : > { %1616 = vmatprep.subr.bf16.mxu0 (!%p387_p2), %v1756_v8  ;;  %1629 = vmatprep.mubr.msk.f32.mxu1 (!%p387_p2), %vm1757_vm1, %v1756_v8  ;;  %v1545_v20 = vld [vmem:[%s2018_s4] ss:$0 sm:$0xff] (!%p387_p2)  ;;  %s1762_s14 = smov (!%p387_p2), 80   ;;  %s1763_s15 = smov (!%p387_p2), 112   ;;  %vm631_vm6 = vcmask (!%p387_p2), 39936   ;;  %vm1219_vm7 = vcmask (!%p387_p2), 130048  }
   0x9   : > { %s1764_s16 = smov (!%p387_p2), 72   ;;  %s1765_s17 = smov (!%p387_p2), 104   ;;  %vm1221_vm8 = vcmask (!%p387_p2), 195584   ;;  %vm1429_vm9 = vcmask (!%p387_p2), 523264  }
   0xa   : > { %s1766_s18 = smov (!%p387_p2), 48   ;;  %s1767_s19 = smov (!%p387_p2), 40  }
   0xb   : > { %1617 = vmatpush3.bf16.msra.mxu0 (!%p387_p2), %v1715_v9  ;;  %s1768_s20 = smov (!%p387_p2), 56  }
   0xc   : > { %1622 = vmatprep.subr.mxu0 (!%p387_p2), %v1756_v8 }
   0xd   : > { %s2029_s26 = smov (!%p428_p3, %s1536_s26), 1 }
   0xe   : > { %s1541_s27 = sshll.u32 %s2029_s26, 3 }
   0xf   : > { %s431_s30 = scalar_lea.vmem %s2014_s0, %s1541_s27 }
  0x10   : > { %v1858_v0 = vld [vmem:[%s431_s30] sm:$0x1f]  ;;  %s1761_s30 = smov 120  }
  0x11   : > { %v439_v1 = vsel %vm438_vm0, %v1858_v0, 0.0 }
  0x12   : > { %440 = vadd.xlane.f32.xlu0 %v439_v1 }
  0x9f   : > { %v441_v2 = vpop.xlane.xlu0 %440 }
  0xa0   : > { %v443_v3 = vmul.f32 0.03125, %v441_v2 }
  0xa2   : > { %v444_v4 = vsub.f32 %v1858_v0, %v443_v3 }
  0xa4   : > { %v445_v5 = vmul.f32 %v444_v4, %v444_v4 }
  0xa6   : > { %v446_v6 = vsel %vm438_vm0, %v445_v5, 0.0 }
  0xa7   : > { %447 = vadd.xlane.f32.xlu0 %v446_v6 }
 0x134   : > { %v448_v10 = vpop.xlane.xlu0 %447 }
 0x135   : > { %v449_v11 = vmul.f32 0.03125, %v448_v10 }
 0x137   : > { %v450_v12 = vadd.f32 1e-05, %v449_v11 }
 0x139   : > { %1724 = vrsqrt.f32 %v450_v12 }
 0x143   : > { %v1725_v13 = vpop.eup %1724 }
 0x144   : > { %v452_v15 = vmul.f32 %v1725_v13, %v444_v4 }
 0x146   : > { %v460_v17 = vmul.f32 %v1543_v14, %v452_v15 }
 0x148   : > { %v468_v18 = vadd.f32 %v1544_v16, %v460_v17 }
 0x14a   : > { %v469_v19 = vpack.c.bf16 %v468_v18, %v468_v18 }
 0x14c   : > { %1619 = vmatmul.mubr.msk.bf16.vlgmr.msra.gmra.mrb[0].mxu0 %vm493_vm2, %v469_v19 }
 0x14d   : > { %1624 = vmatprep.mubr.msk.f32.mxu0 %vm1757_vm1, %v1756_v8 }
 0x21f   : > { %v531_v21 = vpop.f32.mrb[0].mxu0 }
 0x220   : > { %v1890_v22 = vadd.f32 %v1545_v20, %v531_v21  ;;  %v1620_v23 = vpop.f32.mrb[1].mxu0 }
 0x221   : > { %v534_v24 = vpop.f32.mrb[2].mxu0  ;;  %v1717_v23 = vld [vmem:[%s2019_s5 + $0x8] sm:$0xff]  }
 0x222   : > { %629 = vrot.lane.b32.xlu0 %v1890_v22, %s1758_s24  ;;  %539 = vrot.lane.b32.xlu1 %v1890_v22, %s1759_s28  ;;  %v1621_v25 = vpop.f32.mrb[3].mxu0  ;;  %v537_v26 = vmul.f32 0.35355338, %v1890_v22  ;;  %s1769_s28 = smov 8   ;;  %s435_s24 = scalar_lea.vmem %s2027_s13, %s1541_s27 }
 0x226   : > { %710 = vrot.lane.b32.xlu0 %v1890_v22, %s1760_s29  ;;  %s1770_s29 = smov 16  }
 0x22a   : > { %708 = vrot.lane.b32.xlu0 %v537_v26, %s1761_s30  ;;  %s1771_s30 = smov 24  }
 0x294   : > { %v630_v27 = vpop.permute.xlu0 %629  ;;  %v540_v28 = vpop.permute.xlu1 %539 }
 0x295   : > { %1623 = vmatpush3.xpose.msk.msra.mxu0 %vm541_vm3, %v540_v28  ;;  %1628 = vmatpush3.msk.msra.mxu1 %vm635_vm4, %v630_v27 }
 0x296   : > { %1632 = vmatprep.subr.mxu1 %v1756_v8  ;;  %1637 = vmatprep.subr.mxu0 %v1756_v8 }
 0x298   : > { %1625 = vmatmul.mubr.msk.f32.vlgmr.msra.gmra.mrb[4].mxu0 %vm541_vm3, %v537_v26  ;;  %v711_v37 = vpop.permute.xlu0 %710 }
 0x299   : > { %1639 = vmatprep.mubr.msk.f32.mxu0 %vm1757_vm1, %v1756_v8 }
 0x29c   : > { %v709_v38 = vpop.permute.xlu0 %708 }
 0x36b   : > { %v613_v29 = vpop.f32.mrb[4].mxu0 }
 0x36c   : > { %v1626_v30 = vpop.f32.mrb[5].mxu0  ;;  %v618_v31 = vsel %vm617_vm5, %v613_v29, -inf }
 0x36d   : > { %619 = vmax.xlane.f32.xlu1 %v618_v31 }
 0x37e   : > { %876 = vrot.lane.b32.xlu1 %v1890_v22, %s1762_s14 }
 0x3fa   : > { %v620_v32 = vpop.xlane.xlu1 %619 }
 0x3fb   : > { %v621_v33 = vsub.f32 %v613_v29, %v620_v32 }
 0x3fd   : > { %v622_v34 = vmul.f32 1.442695, %v621_v33 }
 0x3fe   : > { %v877_v43 = vpop.permute.xlu1 %876 }
 0x3ff   : > { %1726 = vpow2.f32 %v622_v34 }
 0x409   : > { %v1727_v35 = vpop.eup %1726 }
 0x40a   : > { %v624_v36 = vsel %vm617_vm5, %v1727_v35, 0.0 }
 0x40b   : > { %625 = vadd.xlane.f32.xlu0 %v624_v36 }
 0x421   : > { %874 = vrot.lane.b32.xlu0 %v537_v26, %s1763_s15 }
 0x425   : > { %1042 = vrot.lane.b32.xlu0 %v1890_v22, %s1764_s16 }
 0x429   : > { %1040 = vrot.lane.b32.xlu0 %v537_v26, %s1765_s17 }
 0x498   : > { %v626_v39 = vpop.xlane.xlu0 %625 }
 0x499   : > { %1728 = vrcp.f32 %v626_v39 }
 0x49c   : > { %v875_v42 = vpop.permute.xlu0 %874 }
 0x4a0   : > { %v1043_v44 = vpop.permute.xlu0 %1042 }
 0x4a3   : > { %v1729_v40 = vpop.eup %1728 }
 0x4a4   : > { %v628_v41 = vmul.f32 %v1729_v40, %v1727_v35  ;;  %v1041_v45 = vpop.permute.xlu0 %1040 }
 0x4a6   : > { %1630 = vmatmul.mubr.msk.f32.vlgmr.msra.gmra.mrb[0].mxu1 %vm631_vm6, %v628_v41 }
 0x4a7   : > { %1633 = vmatpush3.xpose.msk.msra.mxu1 %vm541_vm3, %v711_v37  ;;  %1634 = vmatprep.mubr.msk.f32.mxu1 %vm1757_vm1, %v1756_v8 }
 0x4a8   : > { %1642 = vmatprep.subr.mxu1 %v1756_v8 }
 0x4aa   : > { %1635 = vmatmul.mubr.msk.f32.vlgmr.msra.gmra.mrb[2].mxu1 %vm541_vm3, %v709_v38  ;;  %v1568_v38 = vld [vmem:[%s2020_s6] ss:$0 sm:$0xff] }
 0x4ab   : > { %1643 = vmatpush3.xpose.msk.msra.mxu1 %vm541_vm3, %v877_v43  ;;  %1644 = vmatprep.mubr.msk.f32.mxu1 %vm1757_vm1, %v1756_v8 }
 0x4ac   : > { %1652 = vmatprep.subr.mxu1 %v1756_v8 }
 0x4ae   : > { %1645 = vmatmul.mubr.msk.f32.vlgmr.msra.gmra.mrb[4].mxu1 %vm541_vm3, %v875_v42 }
 0x4af   : > { %1653 = vmatpush3.xpose.msk.msra.mxu1 %vm541_vm3, %v1043_v44  ;;  %1654 = vmatprep.mubr.msk.f32.mxu1 %vm1757_vm1, %v1756_v8 }
 0x4b0   : > { %1662 = vmatprep.subr.bf16.mxu1 %v1756_v8 }
 0x4b2   : > { %1655 = vmatmul.mubr.msk.f32.vlgmr.msra.gmra.mrb[6].mxu1 %vm541_vm3, %v1041_v45 }
 0x4b3   : > { %1666 = vmatprep.mubr.msk.bf16.mxu1 %vm1757_vm1, %v1756_v8 }
 0x579   : > { %v1925_v46 = vpop.f32.mrb[0].mxu1 }
 0x57a   : > { %v1631_v47 = vpop.f32.mrb[1].mxu1 }
 0x57d   : > { %v782_v48 = vpop.f32.mrb[2].mxu1 }
 0x57e   : > { %v1636_v49 = vpop.f32.mrb[3].mxu1  ;;  %v786_v50 = vsel %vm617_vm5, %v782_v48, -inf }
 0x57f   : > { %787 = vmax.xlane.f32.xlu0 %v786_v50  ;;  %v1718_v50 = vld [vmem:[%s2023_s9] sm:$0xff]  }
 0x581   : > { %v948_v51 = vpop.f32.mrb[4].mxu1 }
 0x582   : > { %v1646_v52 = vpop.f32.mrb[5].mxu1  ;;  %v952_v53 = vsel %vm617_vm5, %v948_v51, -inf }
 0x583   : > { %953 = vmax.xlane.f32.xlu1 %v952_v53 }
 0x585   : > { %v1114_v54 = vpop.f32.mrb[6].mxu1 }
 0x586   : > { %v1656_v55 = vpop.f32.mrb[7].mxu1  ;;  %v1118_v56 = vsel %vm617_vm5, %v1114_v54, -inf }
 0x587   : > { %1119 = vmax.xlane.f32.xlu0 %v1118_v56  ;;  %v1569_v55 = vld [vmem:[%s2021_s7] ss:$0 sm:$0xff] }
 0x594   : > { %963 = vrot.lane.b32.xlu1 %v1890_v22, %s1766_s18 }
 0x60c   : > { %v788_v57 = vpop.xlane.xlu0 %787 }
 0x60d   : > { %v789_v58 = vsub.f32 %v782_v48, %v788_v57  ;;  %v1570_v57 = vld [vmem:[%s2022_s8] ss:$0 sm:$0xff] }
 0x60f   : > { %v790_v59 = vmul.f32 1.442695, %v789_v58 }
 0x610   : > { %v954_v60 = vpop.xlane.xlu1 %953 }
 0x611   : > { %1730 = vpow2.f32 %v790_v59  ;;  %v955_v61 = vsub.f32 %v948_v51, %v954_v60 }
 0x613   : > { %v956_v62 = vmul.f32 1.442695, %v955_v61  ;;  %v1720_v61 = vld [vmem:[%s2025_s11] sm:$0xff]  }
 0x614   : > { %v1120_v63 = vpop.xlane.xlu0 %1119  ;;  %v964_v11 = vpop.permute.xlu1 %963 }
 0x615   : > { %1732 = vpow2.f32 %v956_v62  ;;  %v1121_v1 = vsub.f32 %v1114_v54, %v1120_v63  ;;  %v1721_v62 = vld [vmem:[%s2025_s11 + $0x8] sm:$0xff]   ;;  %v1722_v63 = vld [vmem:[%s2025_s11 + $0x10] sm:$0xff]  }
 0x617   : > { %v1122_v2 = vmul.f32 1.442695, %v1121_v1  ;;  %v1723_v1 = vld [vmem:[%s2025_s11 + $0x18] sm:$0xff]  }
 0x619   : > { %1734 = vpow2.f32 %v1122_v2  ;;  %v1571_v2 = vld [vmem:[%s2024_s10] ss:$0 sm:$0xff] }
 0x61b   : > { %v1731_v3 = vpop.eup %1730 }
 0x61c   : > { %v792_v4 = vsel %vm617_vm5, %v1731_v3, 0.0 }
 0x61d   : > { %793 = vadd.xlane.f32.xlu0 %v792_v4 }
 0x61f   : > { %v1733_v5 = vpop.eup %1732 }
 0x620   : > { %v958_v6 = vsel %vm617_vm5, %v1733_v5, 0.0 }
 0x621   : > { %959 = vadd.xlane.f32.xlu0 %v958_v6 }
 0x623   : > { %v1735_v7 = vpop.eup %1734 }
 0x624   : > { %v1124_v9 = vsel %vm617_vm5, %v1735_v7, 0.0 }
 0x625   : > { %1125 = vadd.xlane.f32.xlu1 %v1124_v9 }
 0x636   : > { %1129 = vrot.lane.b32.xlu1 %v1890_v22, %s1767_s19 }
 0x637   : > { %797 = vrot.lane.b32.xlu0 %v1890_v22, %s1768_s20  ;;  %v1716_v22 = vld [vmem:[%s2019_s5] sm:$0xff]  }
 0x638   : > { %1663 = vmatpush3.bf16.msra.mxu1 %v1716_v22 }
 0x639   : > { %1664 = vmatprep.subr.bf16.mxu1 %v1756_v8 }
 0x63c   : > { %1665 = vmatpush3.bf16.msra.mxu1 %v1717_v23 }
 0x63d   : > { %1678 = vmatprep.subr.bf16.mxu1 %v1756_v8 }
 0x6aa   : > { %v794_v10 = vpop.xlane.xlu0 %793 }
 0x6ab   : > { %1736 = vrcp.f32 %v794_v10 }
 0x6ae   : > { %v960_v12 = vpop.xlane.xlu0 %959 }
 0x6af   : > { %1738 = vrcp.f32 %v960_v12 }
 0x6b2   : > { %v1126_v13 = vpop.xlane.xlu1 %1125  ;;  %v798_v14 = vpop.permute.xlu0 %797 }
 0x6b3   : > { %1740 = vrcp.f32 %v1126_v13  ;;  %1638 = vmatpush3.msk.msra.mxu0 %vm635_vm4, %v798_v14 }
 0x6b4   : > { %1647 = vmatprep.subr.mxu0 %v1756_v8 }
 0x6b5   : > { %v1737_v15 = vpop.eup %1736 }
 0x6b6   : > { %v796_v16 = vmul.f32 %v1737_v15, %v1731_v3  ;;  %v1130_v19 = vpop.permute.xlu1 %1129 }
 0x6b8   : > { %1640 = vmatmul.mubr.msk.f32.vlgmr.msra.gmra.mrb[6].mxu0 %vm631_vm6, %v796_v16  ;;  %v1581_v16 = vld [vmem:[%s2026_s12] ss:$0 sm:$0xff] }
 0x6b9   : > { %v1739_v17 = vpop.eup %1738  ;;  %1648 = vmatpush3.msk.msra.mxu0 %vm635_vm4, %v964_v11  ;;  %1649 = vmatprep.mubr.msk.f32.mxu0 %vm1757_vm1, %v1756_v8 }
 0x6ba   : > { %v962_v18 = vmul.f32 %v1739_v17, %v1733_v5  ;;  %1657 = vmatprep.subr.mxu0 %v1756_v8 }
 0x6bc   : > { %1650 = vmatmul.mubr.msk.f32.vlgmr.msra.gmra.mrb[8].mxu0 %vm631_vm6, %v962_v18 }
 0x6bd   : > { %v1741_v20 = vpop.eup %1740  ;;  %1658 = vmatpush3.msk.msra.mxu0 %vm635_vm4, %v1130_v19  ;;  %1659 = vmatprep.mubr.msk.f32.mxu0 %vm1757_vm1, %v1756_v8 }
 0x6be   : > { %v1128_v21 = vmul.f32 %v1741_v20, %v1735_v7  ;;  %1670 = vmatprep.subr.bf16.mxu0 %v1756_v8 }
 0x6c0   : > { %1660 = vmatmul.mubr.msk.f32.vlgmr.msra.gmra.mrb[10].mxu0 %vm631_vm6, %v1128_v21 }
 0x6c1   : > { %1674 = vmatprep.mubr.msk.bf16.mxu0 %vm1757_vm1, %v1756_v8  ;;  %1671 = vmatpush3.bf16.msra.mxu0 %v1718_v50 }
 0x6c2   : > { %1672 = vmatprep.subr.bf16.mxu0 %v1756_v8 }
 0x78b   : > { %v870_v24 = vpop.f32.mrb[6].mxu0 }
 0x78c   : > { %1207 = vrot.lane.b32.xlu1 %v870_v24, %s1769_s28  ;;  %v1641_v25 = vpop.f32.mrb[7].mxu0 }
 0x78f   : > { %v1036_v26 = vpop.f32.mrb[8].mxu0 }
 0x790   : > { %1211 = vrot.lane.b32.xlu0 %v1036_v26, %s1770_s29  ;;  %v1651_v27 = vpop.f32.mrb[9].mxu0 }
 0x793   : > { %v1202_v28 = vpop.f32.mrb[10].mxu0 }
 0x794   : > { %1215 = vrot.lane.b32.xlu1 %v1202_v28, %s1771_s30  ;;  %v1661_v29 = vpop.f32.mrb[11].mxu0 }
 0x7fe   : > { %v1208_v30 = vpop.permute.xlu1 %1207 }
 0x7ff   : > { %v1218_v32 = vsel %vm541_vm3, %v1925_v46, %v1208_v30 }
 0x802   : > { %v1212_v31 = vpop.permute.xlu0 %1211 }
 0x803   : > { %v1220_v33 = vsel %vm1219_vm7, %v1218_v32, %v1212_v31 }
 0x806   : > { %v1216_v34 = vpop.permute.xlu1 %1215 }
 0x807   : > { %v1222_v35 = vsel %vm1221_vm8, %v1220_v33, %v1216_v34 }
 0x808   : > { %v1223_v36 = vpack.c.bf16 %v1222_v35, %v1222_v35 }
 0x80a   : > { %1667 = vmatmul.mubr.msk.bf16.vlgmr.msra.gmra.mrb[8].mxu1 %vm493_vm2, %v1223_v36 }
 0x80b   : > { %1686 = vmatprep.mubr.msk.bf16.mxu1 %vm1757_vm1, %v1756_v8  ;;  %1679 = vmatpush3.bf16.msra.mxu1 %v1720_v61 }
 0x80c   : > { %1680 = vmatprep.subr.bf16.mxu1 %v1756_v8 }
 0x80f   : > { %1681 = vmatpush3.bf16.msra.mxu1 %v1721_v62 }
 0x810   : > { %1682 = vmatprep.subr.bf16.mxu1 %v1756_v8 }
 0x813   : > { %1683 = vmatpush3.bf16.msra.mxu1 %v1722_v63 }
 0x814   : > { %1684 = vmatprep.subr.bf16.mxu1 %v1756_v8 }
 0x817   : > { %1685 = vmatpush3.bf16.msra.mxu1 %v1723_v1 }
 0x8dd   : > { %v1277_v37 = vpop.f32.mrb[8].mxu1 }
 0x8de   : > { %v1283_v39 = vadd.f32 %v1277_v37, %v1858_v0  ;;  %v1668_v40 = vpop.f32.mrb[9].mxu1  ;;  %v1719_v0 = vld [vmem:[%s2023_s9 + $0x8] sm:$0xff]  }
 0x8df   : > { %v1280_v41 = vpop.f32.mrb[10].mxu1  ;;  %1673 = vmatpush3.bf16.msra.mxu0 %v1719_v0 }
 0x8e0   : > { %v1291_v42 = vadd.f32 %v1568_v38, %v1283_v39  ;;  %v1669_v43 = vpop.f32.mrb[11].mxu1 }
 0x8e2   : > { %v1292_v44 = vsel %vm438_vm0, %v1291_v42, 0.0 }
 0x8e3   : > { %1293 = vadd.xlane.f32.xlu0 %v1292_v44 }
 0x970   : > { %v1294_v45 = vpop.xlane.xlu0 %1293 }
 0x971   : > { %v1295_v46 = vmul.f32 0.03125, %v1294_v45 }
 0x973   : > { %v1296_v47 = vsub.f32 %v1291_v42, %v1295_v46 }
 0x975   : > { %v1297_v48 = vmul.f32 %v1296_v47, %v1296_v47 }
 0x977   : > { %v1298_v49 = vsel %vm438_vm0, %v1297_v48, 0.0 }
 0x978   : > { %1299 = vadd.xlane.f32.xlu1 %v1298_v49 }
 0xa05   : > { %v1300_v51 = vpop.xlane.xlu1 %1299 }
 0xa06   : > { %v1301_v52 = vmul.f32 0.03125, %v1300_v51 }
 0xa08   : > { %v1302_v53 = vadd.f32 1e-05, %v1301_v52 }
 0xa0a   : > { %1742 = vrsqrt.f32 %v1302_v53 }
 0xa14   : > { %v1743_v54 = vpop.eup %1742 }
 0xa15   : > { %v1304_v56 = vmul.f32 %v1743_v54, %v1296_v47 }
 0xa17   : > { %v1312_v58 = vmul.f32 %v1569_v55, %v1304_v56 }
 0xa19   : > { %v1320_v59 = vadd.f32 %v1570_v57, %v1312_v58 }
 0xa1b   : > { %v1321_v60 = vpack.c.bf16 %v1320_v59, %v1320_v59 }
 0xa1d   : > { %1675 = vmatmul.mubr.msk.bf16.vlgmr.msra.gmra.mrb[12].mxu0 %vm493_vm2, %v1321_v60 }
 0xaf0   : > { %v1382_v3 = vpop.f32.mrb[12].mxu0 }
 0xaf1   : > { %v1383_v4 = vadd.f32 %v1571_v2, %v1382_v3  ;;  %v1676_v5 = vpop.f32.mrb[13].mxu0 }
 0xaf2   : > { %v1385_v6 = vpop.f32.mrb[14].mxu0 }
 0xaf3   : > { %v1575_v7 = vmul.f32 -1.702, %v1383_v4  ;;  %v1677_v9 = vpop.f32.mrb[15].mxu0 }
 0xaf5   : > { %v1390_v10 = vmul.f32 1.442695, %v1575_v7 }
 0xaf7   : > { %1744 = vpow2.f32 %v1390_v10 }
 0xb01   : > { %v1745_v11 = vpop.eup %1744 }
 0xb02   : > { %v1392_v8 = vadd.f32 1.0, %v1745_v11 }
 0xb04   : > { %1746 = vrcp.f32 %v1392_v8 }
 0xb0e   : > { %v1747_v12 = vpop.eup %1746 }
 0xb0f   : > { %v1395_v13 = vmul.f32 %v1747_v12, %v1383_v4 }
 0xb11   : > { %v1396_v14 = vpack.c.bf16 %v1395_v13, %v1395_v13 }
 0xb13   : > { %1687 = vmatmul.mubr.msk.bf16.vlgmr.msra.gmra.mrb[12].mxu1 %vm1429_vm9, %v1396_v14 }
 0xbe6   : > { %v1467_v15 = vpop.f32.mrb[12].mxu1 }
 0xbe7   : > { %v1473_v17 = vadd.f32 %v1467_v15, %v1291_v42  ;;  %v1688_v18 = vpop.f32.mrb[13].mxu1 }
 0xbe8   : > { %v1470_v19 = vpop.f32.mrb[14].mxu1 }
 0xbe9   : > { %v1481_v20 = vadd.f32 %v1581_v16, %v1473_v17  ;;  %v1689_v21 = vpop.f32.mrb[15].mxu1 }
 0xbeb   : > { %1482 = vst.msk [vmem:[%s435_s24] sm:$0x1f] %vm438_vm0, %v1481_v20 }
 0xbec PF: > { %s23_s25 = sadd.s32 1, %s1754_s25  }
 0xbed   : > { %p20_p4 = scmp.ge.s32.totalorder %s23_s25, 4  }
 0xbef   :  { %22 = sbr.rel (!%p20_p4) target bundleno = 1 (0x1), region = 102 }

</bundles_post_ra>
